<compile_context>
chip_gen: v7x
topology: tpu7x:2x2x1
jax: 0.10.0
libtpu: 0.0.40
codegen_flags: <defaults>
</compile_context>

<pallas_src>
import jax
import jax.numpy as jnp
from jax.experimental import pallas as pl
from jax.experimental.pallas import tpu as pltpu

LANE = 128
SUBLANE = 8


def _round_up(x: int, m: int) -> int:
    return (x + m - 1) // m * m


def _maybe_cast(v, dtype):
    return v if v.dtype == dtype else v.astype(dtype)


def _make_mlp_kernel(num_layers: int, activation: str, compute_dtype, d_pad: int,
                     out_pad: int):
    """Fused MLP kernel body operating on one (TM, d_pad) batch tile."""
    if activation == "relu":
        act = lambda v: jnp.maximum(v, jnp.float32(0.0))
    elif activation == "tanh":
        act = jnp.tanh
    else:
        raise ValueError(f"unsupported activation: {activation}")

    def kernel(x_ref, w_ref, b_ref, out_ref):
        # x_ref:   (TM, d_pad)             padded activations, compute_dtype
        # w_ref:   (L, d_pad, d_pad)       packed zero-padded weights (resident)
        # b_ref:   (L, 1, d_pad)           packed zero-padded biases, f32 (resident)
        # out_ref: (TM, out_pad)           lane-dense padded output
        h = x_ref[...]
        for i in range(num_layers):
            last = i == num_layers - 1
            n_out = out_pad if last else d_pad
            # Static int + lane-aligned static slices -> cheap sub-block loads.
            w = w_ref[i, :, :n_out]
            b = b_ref[i, :, :n_out]
            acc = jnp.dot(_maybe_cast(h, compute_dtype), w,
                          preferred_element_type=jnp.float32) + b
            # Zero-padded lanes stay zero: relu(0)=tanh(0)=0, padded W rows/cols=0.
            h = acc if last else act(acc)
        out_ref[...] = h.astype(out_ref.dtype)

    return kernel


def mlp_forward(x, params, activation, *, compute_dtype=jnp.float32, tm=512):
    """Run the fused MLP Pallas kernel.

    x:      (batch, input_dim) float32
    params: list of (W, b) with W: (in, out), b: (1, out)  (PyTorch Linear, transposed)
    """
    num_layers = len(params)
    batch, in_dim = x.shape
    out_dim = params[-1][0].shape[1]

    # ---- Common lane-padded feature width; narrow lane-padded output width ----
    dims = [in_dim] + [w.shape[1] for (w, _) in params]
    d_pad = max(_round_up(d, LANE) for d in dims)
    out_pad = _round_up(out_dim, LANE)

    # ---- Pack all weights / biases into two contiguous padded operands ----
    w_packed = jnp.zeros((num_layers, d_pad, d_pad), jnp.float32)
    b_packed = jnp.zeros((num_layers, 1, d_pad), jnp.float32)
    for i, (w, b) in enumerate(params):
        w_packed = w_packed.at[i, : w.shape[0], : w.shape[1]].set(w)
        b_packed = b_packed.at[i, :, : b.shape[1]].set(b)
    w_packed = _maybe_cast(w_packed, compute_dtype)   # halves weight DMA bytes in bf16

    # ---- Batch tiling: grid over batch rows, params resident across the grid ----
    tm = min(tm, _round_up(batch, SUBLANE))
    batch_pad = _round_up(batch, tm)
    if batch_pad == batch and d_pad == in_dim and x.dtype == compute_dtype:
        x_pad = x   # already aligned; skip the padding copy
    else:
        x_pad = jnp.zeros((batch_pad, d_pad), compute_dtype)
        x_pad = x_pad.at[:batch, :in_dim].set(_maybe_cast(x, compute_dtype))

    grid = (batch_pad // tm,)
    kernel = _make_mlp_kernel(num_layers, activation, compute_dtype, d_pad, out_pad)

    itemsize = jnp.dtype(compute_dtype).itemsize
    flops = 2 * batch_pad * d_pad * (d_pad * (num_layers - 1) + out_pad)
    transcendentals = batch_pad * d_pad * (num_layers - 1) if activation == "tanh" else 0
    bytes_accessed = (batch_pad * d_pad * itemsize               # x
                      + num_layers * d_pad * d_pad * itemsize    # W (resident, one DMA)
                      + num_layers * d_pad * 4                   # b
                      + batch_pad * out_pad * 4)                 # out

    out_arr = pl.pallas_call(
        kernel,
        out_shape=jax.ShapeDtypeStruct((batch_pad, out_pad), jnp.float32),
        grid_spec=pltpu.PrefetchScalarGridSpec(
            num_scalar_prefetch=0,
            grid=grid,
            in_specs=[
                pl.BlockSpec((tm, d_pad), lambda i: (i, 0)),                      # x tile
                pl.BlockSpec((num_layers, d_pad, d_pad), lambda i: (0, 0, 0)),    # resident W
                pl.BlockSpec((num_layers, 1, d_pad), lambda i: (0, 0, 0)),        # resident b
            ],
            out_specs=pl.BlockSpec((tm, out_pad), lambda i: (i, 0)),
        ),
        compiler_params=pltpu.CompilerParams(
            dimension_semantics=("parallel",),  # v7x shards the batch grid across both TCs
        ),
        cost_estimate=pl.CostEstimate(
            flops=flops, transcendentals=transcendentals, bytes_accessed=bytes_accessed),
    )(x_pad, w_packed, b_packed)

    # Real output is the first out_dim lanes of the first `batch` rows.
    return out_arr[:batch, :out_dim]


def init_mlp_params(key, hidden_layer_sizes, input_dim):
    """Deterministic parameter init mirroring the PyTorch module's layer shapes."""
    num_layers = len(hidden_layer_sizes) + 1
    dims = [input_dim] + list(hidden_layer_sizes) + [1]
    params = []
    for i in range(num_layers):
        key, wk, bk = jax.random.split(key, 3)
        fan_in, fan_out = dims[i], dims[i + 1]
        bound = 1.0 / jnp.sqrt(jnp.float32(fan_in))  # PyTorch nn.Linear default range
        w = jax.random.uniform(wk, (fan_in, fan_out), jnp.float32, -bound, bound)
        b = jax.random.uniform(bk, (1, fan_out), jnp.float32, -bound, bound)
        params.append((w, b))
    return params


def mlp_reference(x, params, activation):
    act = (lambda v: jnp.maximum(v, 0.0)) if activation == "relu" else jnp.tanh
    h = x
    for i, (w, b) in enumerate(params):
        h = h @ w + b
        if i < len(params) - 1:
            h = act(h)
    return h


if __name__ == "__main__":
    key = jax.random.PRNGKey(0)

    # Case 1: small, single batch tile, tanh (matches original module config).
    batch, input_dim = 8, 16
    hidden_layer_sizes = [32, 32]
    key, xk, pk = jax.random.split(key, 3)
    x = jax.random.normal(xk, (batch, input_dim), jnp.float32)
    params = init_mlp_params(pk, hidden_layer_sizes, input_dim)

    out = jax.block_until_ready(mlp_forward(x, params, "tanh"))
    ref = mlp_reference(x, params, "tanh")
    assert out.shape == (batch, 1), out.shape
    assert jnp.allclose(out, ref, atol=1e-5, rtol=1e-5), "tanh mismatch vs reference"

    # Case 2: multi-tile batch grid with ragged batch + relu (exercises pipelining path).
    batch2 = 37
    key, xk2, pk2 = jax.random.split(key, 3)
    x2 = jax.random.normal(xk2, (batch2, input_dim), jnp.float32)
    params2 = init_mlp_params(pk2, hidden_layer_sizes, input_dim)
    out2 = jax.block_until_ready(mlp_forward(x2, params2, "relu", tm=16))
    ref2 = mlp_reference(x2, params2, "relu")
    assert out2.shape == (batch2, 1), out2.shape
    assert jnp.allclose(out2, ref2, atol=1e-5, rtol=1e-5), "relu mismatch vs reference"

    # Case 3: bf16 MXU path (f32 accumulation) — loose tolerance, just exercises codegen.
    out3 = jax.block_until_ready(
        mlp_forward(x, params, "tanh", compute_dtype=jnp.bfloat16)
    )
    assert out3.shape == (batch, 1), out3.shape
    assert jnp.allclose(out3, ref, atol=1e-1, rtol=1e-1), "bf16 path diverged"

    # Case 4: wider hidden layers (d_pad=256 > out_pad=128) — exercises the narrow
    # final-layer slice + narrow output writeback path.
    batch4 = 16
    hidden4 = [256, 256]
    key, xk4, pk4 = jax.random.split(key, 3)
    x4 = jax.random.normal(xk4, (batch4, input_dim), jnp.float32)
    params4 = init_mlp_params(pk4, hidden4, input_dim)
    out4 = jax.block_until_ready(mlp_forward(x4, params4, "tanh"))
    ref4 = mlp_reference(x4, params4, "tanh")
    assert out4.shape == (batch4, 1), out4.shape
    assert jnp.allclose(out4, ref4, atol=1e-4, rtol=1e-4), "wide-hidden mismatch vs reference"

    print("KERNEL_OK")
</pallas_src>

<mosaic_0001>
module attributes {stable_mosaic.version = 11 : i64} {
  func.func @kernel(%arg0: i32, %arg1: memref<8x128xf32, #tpu.memory_space<vmem>>, %arg2: memref<3x128x128xf32, #tpu.memory_space<vmem>>, %arg3: memref<3x1x128xf32, #tpu.memory_space<vmem>>, %arg4: memref<8x128xf32, #tpu.memory_space<vmem>>) attributes {dimension_semantics = [#tpu.dimension_semantics<parallel>], iteration_bounds = array<i64: 1>, scalar_prefetch = 0 : i64, scratch_operands = 0 : i64, tpu.core_type = #tpu.core_type<tc>, window_params = [{transform_indices = @transform_0, window_bounds = array<i64: 8, 128>}, {pipeline_mode = #tpu.pipeline_mode<synchronous>, transform_indices = @transform_1, window_bounds = array<i64: 3, 128, 128>}, {pipeline_mode = #tpu.pipeline_mode<synchronous>, transform_indices = @transform_2, window_bounds = array<i64: 3, 1, 128>}, {transform_indices = @transform_3, window_bounds = array<i64: 8, 128>}]} {
    %c0 = arith.constant 0 : index
    %c0_0 = arith.constant 0 : index
    %0 = vector.load %arg1[%c0, %c0_0] : memref<8x128xf32, #tpu.memory_space<vmem>>, vector<8x128xf32>
    %c0_1 = arith.constant 0 : index
    %c0_2 = arith.constant 0 : index
    %c0_3 = arith.constant 0 : index
    %1 = vector.load %arg2[%c0_1, %c0_2, %c0_3] : memref<3x128x128xf32, #tpu.memory_space<vmem>>, vector<1x128x128xf32>
    %2 = vector.shape_cast %1 : vector<1x128x128xf32> to vector<128x128xf32>
    %c0_4 = arith.constant 0 : index
    %c0_5 = arith.constant 0 : index
    %c0_6 = arith.constant 0 : index
    %3 = vector.load %arg3[%c0_4, %c0_5, %c0_6] : memref<3x1x128xf32, #tpu.memory_space<vmem>>, vector<1x1x128xf32>
    %4 = vector.shape_cast %3 : vector<1x1x128xf32> to vector<1x128xf32>
    %cst = arith.constant dense<0.000000e+00> : vector<8x128xf32>
    %5 = tpu.matmul %0, %2, %cst {dimension_numbers = #tpu.dot_dimension_numbers<[1], [0], [0], [1], [0, 0, 1, 1], [], []>} : vector<8x128xf32>, vector<128x128xf32>, vector<8x128xf32> -> vector<8x128xf32>
    %6 = vector.broadcast %4 : vector<1x128xf32> to vector<8x128xf32>
    %7 = arith.addf %5, %6 : vector<8x128xf32>
    %8 = math.tanh %7 : vector<8x128xf32>
    %c1 = arith.constant 1 : index
    %c0_7 = arith.constant 0 : index
    %c0_8 = arith.constant 0 : index
    %9 = vector.load %arg2[%c1, %c0_7, %c0_8] : memref<3x128x128xf32, #tpu.memory_space<vmem>>, vector<1x128x128xf32>
    %10 = vector.shape_cast %9 : vector<1x128x128xf32> to vector<128x128xf32>
    %c1_9 = arith.constant 1 : index
    %c0_10 = arith.constant 0 : index
    %c0_11 = arith.constant 0 : index
    %11 = vector.load %arg3[%c1_9, %c0_10, %c0_11] : memref<3x1x128xf32, #tpu.memory_space<vmem>>, vector<1x1x128xf32>
    %12 = vector.shape_cast %11 : vector<1x1x128xf32> to vector<1x128xf32>
    %cst_12 = arith.constant dense<0.000000e+00> : vector<8x128xf32>
    %13 = tpu.matmul %8, %10, %cst_12 {dimension_numbers = #tpu.dot_dimension_numbers<[1], [0], [0], [1], [0, 0, 1, 1], [], []>} : vector<8x128xf32>, vector<128x128xf32>, vector<8x128xf32> -> vector<8x128xf32>
    %14 = vector.broadcast %12 : vector<1x128xf32> to vector<8x128xf32>
    %15 = arith.addf %13, %14 : vector<8x128xf32>
    %16 = math.tanh %15 : vector<8x128xf32>
    %c2 = arith.constant 2 : index
    %c0_13 = arith.constant 0 : index
    %c0_14 = arith.constant 0 : index
    %17 = vector.load %arg2[%c2, %c0_13, %c0_14] : memref<3x128x128xf32, #tpu.memory_space<vmem>>, vector<1x128x128xf32>
    %18 = vector.shape_cast %17 : vector<1x128x128xf32> to vector<128x128xf32>
    %c2_15 = arith.constant 2 : index
    %c0_16 = arith.constant 0 : index
    %c0_17 = arith.constant 0 : index
    %19 = vector.load %arg3[%c2_15, %c0_16, %c0_17] : memref<3x1x128xf32, #tpu.memory_space<vmem>>, vector<1x1x128xf32>
    %20 = vector.shape_cast %19 : vector<1x1x128xf32> to vector<1x128xf32>
    %cst_18 = arith.constant dense<0.000000e+00> : vector<8x128xf32>
    %21 = tpu.matmul %16, %18, %cst_18 {dimension_numbers = #tpu.dot_dimension_numbers<[1], [0], [0], [1], [0, 0, 1, 1], [], []>} : vector<8x128xf32>, vector<128x128xf32>, vector<8x128xf32> -> vector<8x128xf32>
    %22 = vector.broadcast %20 : vector<1x128xf32> to vector<8x128xf32>
    %23 = arith.addf %21, %22 : vector<8x128xf32>
    %c0_19 = arith.constant 0 : index
    %c0_20 = arith.constant 0 : index
    %24 = vector.load %arg4[%c0_19, %c0_20] : memref<8x128xf32, #tpu.memory_space<vmem>>, vector<8x128xf32>
    tpu.vector_store %arg4[%c0_19, %c0_20], %23 {strides = array<i32>} : memref<8x128xf32, #tpu.memory_space<vmem>>, vector<8x128xf32>,
    return
  }
  func.func @transform_0(%arg0: i32) -> (i32, i32) {
    %c0_i32 = arith.constant 0 : i32
    %c0_i32_0 = arith.constant 0 : i32
    return %arg0, %c0_i32 : i32, i32
  }
  func.func @transform_1(%arg0: i32) -> (i32, i32, i32) {
    %c0_i32 = arith.constant 0 : i32
    %c0_i32_0 = arith.constant 0 : i32
    %c0_i32_1 = arith.constant 0 : i32
    %c0_i32_2 = arith.constant 0 : i32
    return %c0_i32, %c0_i32_0, %c0_i32_1 : i32, i32, i32
  }
  func.func @transform_2(%arg0: i32) -> (i32, i32, i32) {
    %c0_i32 = arith.constant 0 : i32
    %c0_i32_0 = arith.constant 0 : i32
    %c0_i32_1 = arith.constant 0 : i32
    %c0_i32_2 = arith.constant 0 : i32
    return %c0_i32, %c0_i32_0, %c0_i32_1 : i32, i32, i32
  }
  func.func @transform_3(%arg0: i32) -> (i32, i32) {
    %c0_i32 = arith.constant 0 : i32
    %c0_i32_0 = arith.constant 0 : i32
    return %arg0, %c0_i32 : i32, i32
  }
}

</mosaic_0001>

<bundles_post_ra>
// kernel: tpu_custom_call.1
= control target key start
LH: loop header
LB: loop body
LE: loop exit
PB: predicated region body
PF: predicated region fallthrough
CT: control target
= control target key end

     0   :  { %8 = vsyncpa [#allocation3], 0  ;;  %s771_s0 = inlined_call_operand.hbm [shape: f32[8,128], index: 0, kind: input, shape index: {}]   ;;  %s772_s1 = inlined_call_operand.hbm [shape: f32[3,128,128], index: 1, kind: input, shape index: {}]   ;;  %s773_s2 = inlined_call_operand.vmem [shape: f32[3,1,128], index: 2, kind: input, shape index: {}]   ;;  %s774_s3 = inlined_call_operand.hbm [shape: f32[8,128], index: 3, kind: output, shape index: {}]  }
   0x1   :  { %9 = vsyncpa [#allocation6], 0 }
   0x2   :  { %10 = vsyncpa [#allocation4], 0  ;;  %s661_s12 = smov [#allocation2]   ;;  %s662_s14 = smov [#allocation5]  }
   0x3   :  { %s17_s13 = sshll.u32 %s661_s12, 4  ;;  %s26_s15 = sshll.u32 %s662_s14, 4  ;;  %s18_s13 = int_to_ptr.vmem [resolvable:$true] %s17_s13  ;;  %s689_s15 = int_to_ptr.vmem [resolvable:$true] %s26_s15 }
   0x4   :  { %s589_s18 = scalar_lea.hbm %s771_s0, 128 }
   0x5   :  { %p590_p0 = scmp.ne.s32.totalorder %s771_s0, %s589_s18  ;;  %p593_p1 = scmp.lt.u32.totalorder %s589_s18, %s771_s0 }
   0x7   :  { %p595_p2 = pnand %p593_p1, %p590_p0 }
   0x9   :  { %598 = shalt.err (!%p595_p2)
}
   0xa   :  { %s599_s23 = scalar_lea.vmem %s18_s13, 128  ;;  %p604_p4 = scmp.lt.s32.totalorder %s18_s13, %s18_s13 }
   0xb   :  { %p600_p3 = scmp.ne.s32.totalorder %s18_s13, %s599_s23  ;;  %p605_p5 = scmp.lt.s32.totalorder %s599_s23, %s599_s23 }
   0xd   :  { %p606_p6 = por %p605_p5, %p604_p4 }
   0xf   :  { %p607_p7 = pnand %p606_p6, %p600_p3 }
  0x11   :  { %610 = shalt.err (!%p607_p7)
}
  0x12   :  { %20 = dma.hbm_to_vmem [thread:$0]  %s771_s0, 128, %s18_s13, [#allocation3]  }
  0x13   :  { %s611_s28 = scalar_lea.hbm %s772_s1, 6144 }
  0x14   :  { %p612_p8 = scmp.ne.s32.totalorder %s772_s1, %s611_s28  ;;  %p615_p9 = scmp.lt.u32.totalorder %s611_s28, %s772_s1 }
  0x16   :  { %p617_p10 = pnand %p615_p9, %p612_p8 }
  0x18   :  { %620 = shalt.err (!%p617_p10)
}
  0x19   :  { %s621_s6 = scalar_lea.vmem %s689_s15, 6144  ;;  %p626_p12 = scmp.lt.s32.totalorder %s689_s15, %s689_s15 }
  0x1a   :  { %p622_p11 = scmp.ne.s32.totalorder %s689_s15, %s621_s6  ;;  %p627_p13 = scmp.lt.s32.totalorder %s621_s6, %s621_s6 }
  0x1c   :  { %p628_p0 = por %p627_p13, %p626_p12 }
  0x1e   :  { %p629_p1 = pnand %p628_p0, %p622_p11 }
  0x20   :  { %632 = shalt.err (!%p629_p1)
}
  0x21   :  { %s663_s0 = smov 128   ;;  %s664_s7 = smov 8  }
  0x22   :  { %32 = dma.hbm_to_vmem [thread:$0]  %s772_s1, 6144, %s689_s15, [#allocation6], %s663_s0, %s663_s0, %s664_s7  }
  0x23   :  { %655 = dma.done.wait [#allocation3], 128  }
  0x24   :  { %656 = vsyncadd [#allocation3], 4294967168 }
  0x25   :  { %657 = dma.done.wait [#allocation6], 6144  }
  0x26   :  { %658 = vsyncadd [#allocation6], 4294961152  ;;  %v665_v0 = vmov 0.0|0.0   ;;  %vm666_vm0 = vmmov 0   ;;  %v667_v1 = vmov 0.0   ;;  %v42_v2 = vld [vmem:[#allocation5] sm:$0xff] }
  0x27   :  { %505 = vmatprep.subr.bf16.mxu0 %v665_v0  ;;  %432 = vmatprep.mubr.msk.f32.mxu0 %vm666_vm0, %v667_v1  ;;  %v43_v3 = vld [vmem:[#allocation5 + $0x8] sm:$0xff]  ;;  %v44_v4 = vld [vmem:[#allocation5 + $0x10] sm:$0xff]  ;;  %v45_v6 = vld [vmem:[#allocation5 + $0x18] sm:$0xff]  ;;  %s668_s15 = smov [#allocation7]  }
  0x28   :  { %529 = vmatprep.subr.bf16.mxu1 %v665_v0  ;;  %467 = vmatprep.mubr.msk.f32.mxu1 %vm666_vm0, %v667_v1  ;;  %v506_v5 = vpack.c.bf16 %v43_v3, %v42_v2  ;;  %v509_v7 = vpack.c.bf16 %v45_v6, %v44_v4  ;;  %v46_v8 = vld [vmem:[#allocation5 + $0x20] sm:$0xff]  ;;  %v47_v9 = vld [vmem:[#allocation5 + $0x28] sm:$0xff]  ;;  %v139_v12 = vld [vmem:[#allocation5 + $0x90] sm:$0xff]  ;;  %s334_s16 = sshll.u32 %s668_s15, 4  ;;  %s335_s16 = int_to_ptr.vmem [resolvable:$true] %s334_s16 }
  0x29   :  { %v137_v10 = vld [vmem:[#allocation5 + $0x80] sm:$0xff]  ;;  %v138_v11 = vld [vmem:[#allocation5 + $0x88] sm:$0xff]  ;;  %v140_v13 = vld [vmem:[#allocation5 + $0x98] sm:$0xff]  ;;  %v512_v14 = vpack.c.bf16 %v47_v9, %v46_v8  ;;  %s633_s17 = scalar_lea.vmem %s335_s16, 128  ;;  %p638_p3 = scmp.lt.s32.totalorder %s335_s16, %s335_s16 }
  0x2a   :  { %507 = vmatpush3.bf16.msra.mxu0 %v506_v5  ;;  %v530_v15 = vpack.c.bf16 %v138_v11, %v137_v10  ;;  %v48_v16 = vld [vmem:[#allocation5 + $0x30] sm:$0xff]  ;;  %v49_v17 = vld [vmem:[#allocation5 + $0x38] sm:$0xff]  ;;  %v533_v18 = vpack.c.bf16 %v140_v13, %v139_v12  ;;  %v141_v19 = vld [vmem:[#allocation5 + $0xa0] sm:$0xff]  ;;  %p634_p2 = scmp.ne.s32.totalorder %s335_s16, %s633_s17  ;;  %p639_p4 = scmp.lt.s32.totalorder %s633_s17, %s633_s17 }
  0x2b   :  { %508 = vmatprep.subr.bf16.mxu0 %v665_v0  ;;  %v142_v20 = vld [vmem:[#allocation5 + $0xa8] sm:$0xff]  ;;  %v515_v21 = vpack.c.bf16 %v49_v17, %v48_v16  ;;  %v50_v22 = vld [vmem:[#allocation5 + $0x40] sm:$0xff]  ;;  %v143_v25 = vld [vmem:[#allocation5 + $0xb0] sm:$0xff] }
  0x2c   :  { %531 = vmatpush3.bf16.msra.mxu1 %v530_v15  ;;  %v51_v23 = vld [vmem:[#allocation5 + $0x48] sm:$0xff]  ;;  %v536_v24 = vpack.c.bf16 %v142_v20, %v141_v19  ;;  %v144_v26 = vld [vmem:[#allocation5 + $0xb8] sm:$0xff]  ;;  %v52_v28 = vld [vmem:[#allocation5 + $0x50] sm:$0xff]  ;;  %p640_p5 = por %p639_p4, %p638_p3 }
  0x2d   :  { %532 = vmatprep.subr.bf16.mxu1 %v665_v0  ;;  %v518_v27 = vpack.c.bf16 %v51_v23, %v50_v22  ;;  %v53_v29 = vld [vmem:[#allocation5 + $0x58] sm:$0xff]  ;;  %v539_v30 = vpack.c.bf16 %v144_v26, %v143_v25  ;;  %v145_v31 = vld [vmem:[#allocation5 + $0xc0] sm:$0xff]  ;;  %v146_v32 = vld [vmem:[#allocation5 + $0xc8] sm:$0xff] }
  0x2e   :  { %510 = vmatpush3.bf16.msra.mxu0 %v509_v7  ;;  %v521_v33 = vpack.c.bf16 %v53_v29, %v52_v28  ;;  %v54_v34 = vld [vmem:[#allocation5 + $0x60] sm:$0xff]  ;;  %v55_v35 = vld [vmem:[#allocation5 + $0x68] sm:$0xff]  ;;  %v542_v36 = vpack.c.bf16 %v146_v32, %v145_v31  ;;  %v56_v38 = vld [vmem:[#allocation5 + $0x70] sm:$0xff]  ;;  %p641_p6 = pnand %p640_p5, %p634_p2 }
  0x2f   :  { %511 = vmatprep.subr.bf16.mxu0 %v665_v0  ;;  %v524_v37 = vpack.c.bf16 %v55_v35, %v54_v34  ;;  %v57_v39 = vld [vmem:[#allocation5 + $0x78] sm:$0xff]  ;;  %v147_v42 = vld [vmem:[#allocation5 + $0xd0] sm:$0xff]  ;;  %v149_v45 = vld [vmem:[#allocation5 + $0xe0] sm:$0xff] }
  0x30   :  { %534 = vmatpush3.bf16.msra.mxu1 %v533_v18  ;;  %v527_v40 = vpack.c.bf16 %v57_v39, %v56_v38  ;;  %v41_v41 = vld [vmem:[#allocation2] sm:$0xff]  ;;  %v150_v46 = vld [vmem:[#allocation5 + $0xe8] sm:$0xff]  ;;  %v151_v48 = vld [vmem:[#allocation5 + $0xf0] sm:$0xff] }
  0x31   :  { %535 = vmatprep.subr.bf16.mxu1 %v665_v0  ;;  %v148_v43 = vld [vmem:[#allocation5 + $0xd8] sm:$0xff]  ;;  %v548_v47 = vpack.c.bf16 %v150_v46, %v149_v45  ;;  %v233_v51 = vld [vmem:[#allocation5 + $0x100] sm:$0xff]  ;;  %v234_v52 = vld [vmem:[#allocation5 + $0x108] sm:$0xff] }
  0x32   :  { %513 = vmatpush3.bf16.msra.mxu0 %v512_v14  ;;  %v545_v44 = vpack.c.bf16 %v148_v43, %v147_v42  ;;  %v152_v49 = vld [vmem:[#allocation5 + $0xf8] sm:$0xff]  ;;  %v235_v53 = vld [vmem:[#allocation5 + $0x110] sm:$0xff]  ;;  %v554_v54 = vpack.c.bf16 %v234_v52, %v233_v51  ;;  %v237_v57 = vld [vmem:[#allocation5 + $0x120] sm:$0xff] }
  0x33   :  { %514 = vmatprep.subr.bf16.mxu0 %v665_v0  ;;  %v551_v50 = vpack.c.bf16 %v152_v49, %v151_v48  ;;  %v236_v55 = vld [vmem:[#allocation5 + $0x118] sm:$0xff]  ;;  %v238_v58 = vld [vmem:[#allocation5 + $0x128] sm:$0xff]  ;;  %v239_v60 = vld [vmem:[#allocation5 + $0x130] sm:$0xff] }
  0x34   :  { %537 = vmatpush3.bf16.msra.mxu1 %v536_v24  ;;  %v557_v56 = vpack.c.bf16 %v236_v55, %v235_v53  ;;  %v560_v59 = vpack.c.bf16 %v238_v58, %v237_v57  ;;  %v240_v61 = vld [vmem:[#allocation5 + $0x138] sm:$0xff]  ;;  %v241_v63 = vld [vmem:[#allocation5 + $0x140] sm:$0xff]  ;;  %v243_v8 = vld [vmem:[#allocation5 + $0x150] sm:$0xff] }
  0x35   :  { %538 = vmatprep.subr.bf16.mxu1 %v665_v0  ;;  %v563_v62 = vpack.c.bf16 %v240_v61, %v239_v60  ;;  %v344_v3 = vld [vmem:[%s773_s2] ss:$0 sm:$0xff]  ;;  %v245_v11 = vld [vmem:[#allocation5 + $0x160] sm:$0xff]  ;;  %v246_v12 = vld [vmem:[#allocation5 + $0x168] sm:$0xff] }
  0x36   :  { %516 = vmatpush3.bf16.msra.mxu0 %v515_v21  ;;  %v244_v9 = vld [vmem:[#allocation5 + $0x158] sm:$0xff]  ;;  %v572_v13 = vpack.c.bf16 %v246_v12, %v245_v11  ;;  %v247_v14 = vld [vmem:[#allocation5 + $0x170] sm:$0xff] }
  0x37   :  { %517 = vmatprep.subr.bf16.mxu0 %v665_v0  ;;  %v569_v10 = vpack.c.bf16 %v244_v9, %v243_v8  ;;  %v248_v15 = vld [vmem:[#allocation5 + $0x178] sm:$0xff] }
  0x38   :  { %540 = vmatpush3.bf16.msra.mxu1 %v539_v30  ;;  %v575_v16 = vpack.c.bf16 %v248_v15, %v247_v14  ;;  %v346_v17 = vld [vmem:[%s773_s2 + $0x1] ss:$0 sm:$0xff]  ;;  %v348_v22 = vld [vmem:[%s773_s2 + $0x2] ss:$0 sm:$0xff] }
  0x39   :  { %541 = vmatprep.subr.bf16.mxu1 %v665_v0 }
  0x3a   :  { %519 = vmatpush3.bf16.msra.mxu0 %v518_v27 }
  0x3b   :  { %520 = vmatprep.subr.bf16.mxu0 %v665_v0 }
  0x3c   :  { %543 = vmatpush3.bf16.msra.mxu1 %v542_v36 }
  0x3d   :  { %544 = vmatprep.subr.bf16.mxu1 %v665_v0 }
  0x3e   :  { %522 = vmatpush3.bf16.msra.mxu0 %v521_v33 }
  0x3f   :  { %523 = vmatprep.subr.bf16.mxu0 %v665_v0 }
  0x40   :  { %546 = vmatpush3.bf16.msra.mxu1 %v545_v44 }
  0x41   :  { %547 = vmatprep.subr.bf16.mxu1 %v665_v0 }
  0x42   :  { %525 = vmatpush3.bf16.msra.mxu0 %v524_v37 }
  0x43   :  { %526 = vmatprep.subr.bf16.mxu0 %v665_v0 }
  0x44   :  { %549 = vmatpush3.bf16.msra.mxu1 %v548_v47 }
  0x45   :  { %550 = vmatprep.subr.bf16.mxu1 %v665_v0 }
  0x46   :  { %528 = vmatpush3.bf16.msra.mxu0 %v527_v40 }
  0x47   :  { %553 = vmatprep.subr.bf16.mxu0 %v665_v0 }
  0x48   :  { %552 = vmatpush3.bf16.msra.mxu1 %v551_v50 }
  0x49   :  { %433 = vmatmul.mubr.f32.vlgmr.msra.gmra.mrb[0].mxu0 %v41_v41 }
  0x4a   :  { %502 = vmatprep.mubr.msk.f32.mxu0 %vm666_vm0, %v667_v1  ;;  %555 = vmatpush3.bf16.msra.mxu0 %v554_v54  ;;  %v242_v1 = vld [vmem:[#allocation5 + $0x148] sm:$0xff] }
  0x4b   :  { %556 = vmatprep.subr.bf16.mxu0 %v665_v0  ;;  %v566_v2 = vpack.c.bf16 %v242_v1, %v241_v63 }
  0x4e   :  { %558 = vmatpush3.bf16.msra.mxu0 %v557_v56 }
  0x4f   :  { %559 = vmatprep.subr.bf16.mxu0 %v665_v0 }
  0x52   :  { %561 = vmatpush3.bf16.msra.mxu0 %v560_v59 }
  0x53   :  { %562 = vmatprep.subr.bf16.mxu0 %v665_v0 }
  0x56   :  { %564 = vmatpush3.bf16.msra.mxu0 %v563_v62 }
  0x57   :  { %565 = vmatprep.subr.bf16.mxu0 %v665_v0 }
  0x5a   :  { %567 = vmatpush3.bf16.msra.mxu0 %v566_v2 }
  0x5b   :  { %568 = vmatprep.subr.bf16.mxu0 %v665_v0 }
  0x5e   :  { %570 = vmatpush3.bf16.msra.mxu0 %v569_v10 }
  0x5f   :  { %571 = vmatprep.subr.bf16.mxu0 %v665_v0 }
  0x62   :  { %573 = vmatpush3.bf16.msra.mxu0 %v572_v13 }
  0x63   :  { %574 = vmatprep.subr.bf16.mxu0 %v665_v0 }
  0x66   :  { %576 = vmatpush3.bf16.msra.mxu0 %v575_v16 }
 0x11c   :  { %v131_v4 = vpop.f32.mrb[0].mxu0 }
 0x11d   :  { %v132_v5 = vadd.f32 %v344_v3, %v131_v4  ;;  %v434_v6 = vpop.f32.mrb[1].mxu0 }
 0x11f   :  { %585 = vtanh.f32 %v132_v5 }
 0x129   :  { %v586_v7 = vpop.eup %585 }
 0x12a   :  { %468 = vmatmul.mubr.f32.vlgmr.msra.gmra.mrb[0].mxu1 %v586_v7 }
 0x1fd   :  { %v227_v18 = vpop.f32.mrb[0].mxu1 }
 0x1fe   :  { %v228_v19 = vadd.f32 %v346_v17, %v227_v18  ;;  %v469_v20 = vpop.f32.mrb[1].mxu1 }
 0x200   :  { %587 = vtanh.f32 %v228_v19 }
 0x20a   :  { %v588_v21 = vpop.eup %587 }
 0x20b   :  { %503 = vmatmul.mubr.f32.vlgmr.msra.gmra.mrb[2].mxu0 %v588_v21 }
 0x2de   :  { %v323_v23 = vpop.f32.mrb[2].mxu0 }
 0x2df   :  { %v324_v24 = vadd.f32 %v348_v22, %v323_v23  ;;  %v504_v0 = vpop.f32.mrb[3].mxu0 }
 0x2e1   :  { %327 = vst [vmem:[#allocation7] sm:$0xff] %v324_v24 }
 0x2e2   :  { %644 = shalt.err (!%p641_p6)
}
 0x2e3   :  { %s645_s20 = scalar_lea.hbm %s774_s3, 128 }
 0x2e4   :  { %p646_p7 = scmp.ne.s32.totalorder %s774_s3, %s645_s20  ;;  %p649_p8 = scmp.lt.u32.totalorder %s645_s20, %s774_s3 }
 0x2e6   :  { %p651_p9 = pnand %p649_p8, %p646_p7 }
 0x2e8   :  { %654 = shalt.err (!%p651_p9)
}
 0x2e9   :  { %337 = dma.vmem_to_hbm [thread:$0]  %s335_s16, 128, %s774_s3, [#allocation4]  }
 0x2ea   :  { %659 = dma.done.wait [#allocation4], 128  }
 0x2eb   :  { %660 = vsyncadd [#allocation4], 4294967168 }
 0x2ec   :  { %341 = vsyncpa [#allocation3], 1 }
 0x2ed   :  { %342 = vsyncpa [#allocation6], 1 }
 0x2ee   :  { %343 = vsyncpa [#allocation4], 1 }

</bundles_post_ra>
